<compile_context>
chip_gen: v7x
topology: tpu7x:2x2x1
jax: 0.10.0
libtpu: 0.0.40
codegen_flags: <defaults>
</compile_context>

<pallas_src>
import jax
import jax.numpy as jnp
from jax.experimental import pallas as pl
from jax.experimental.pallas import tpu as pltpu

_LANE = 128
_SUBLANE = 8
_LARGE_B_TILE = 512  # rows per grid step once the batch is large enough to tile


def _round_up(x, m):
    return (x + m - 1) // m * m


def _svm_kernel(x_ref, w_ref, o_ref):
    # x_ref: [TILE_B, D+1]  (last column == 1.0 -> bias folded into the matmul)
    # w_ref: [D+1, C_pad]   (row D holds the packed biases; VMEM-resident)
    # o_ref: [TILE_B, C_pad] -> single dot, lane-dense (128-wide) unmasked store
    o_ref[...] = jnp.dot(x_ref[...], w_ref[...],
                         preferred_element_type=jnp.float32)


def pack_svm_params(weights, biases):
    """Pack per-pixel Linear params into one lane-dense operand (done once).

    weights: [P, C, D]  (PyTorch Linear layout per pixel model)
    biases : [P, C]
    Returns (w_packed [D+1, C_pad], c_total) where column 2*i + c holds pixel
    model i / class c (matching torch.cat(..., axis=1)) and row D holds the
    biases (so the bias add rides inside the matmul via a constant-1 x column).
    """
    P, C, D = weights.shape
    c_total = P * C
    c_pad = _round_up(c_total, _LANE)
    w_all = weights.reshape(P * C, D).T.astype(jnp.float32)   # [D, P*C]
    b_all = biases.reshape(P * C).astype(jnp.float32)         # [P*C]
    w_packed = jnp.zeros((D + 1, c_pad), jnp.float32)
    w_packed = w_packed.at[:D, :c_total].set(w_all)
    w_packed = w_packed.at[D, :c_total].set(b_all)
    return w_packed, c_total


def svm_forward_padded(x, w_packed, tile_b=None):
    """x: [B, D] -> padded logits [b_pad, C_pad] (valid region: [:B, :c_total]).

    Keeping the result padded lets downstream consumers (predict_pattern) avoid
    a full-size HBM slice copy of the logits.
    """
    B, D = x.shape
    d1, c_pad = w_packed.shape
    assert d1 == D + 1 and c_pad % _LANE == 0

    if tile_b is None:
        b_min = _round_up(B, _SUBLANE)
        # Single grid step for small/medium batches; 512-row tiles for large B
        # (even multi-step grid -> megacore sharding on v7x, ~85% HBM roofline).
        tile_b = b_min if b_min <= _LARGE_B_TILE else _LARGE_B_TILE
    tile_b = max(_SUBLANE, _round_up(tile_b, _SUBLANE))

    b_pad = _round_up(B, tile_b)

    # Augment x with a constant-1 column (bias fold), cast to f32, pad the batch
    # to the tile boundary. x is ~2% of total traffic, so this tiny wrapper copy
    # is irrelevant; padded rows are sliced off by consumers.
    x_aug = jnp.zeros((b_pad, D + 1), jnp.float32)
    x_aug = x_aug.at[:B, :D].set(x.astype(jnp.float32))
    x_aug = x_aug.at[:B, D].set(1.0)

    grid = (b_pad // tile_b,)

    out = pl.pallas_call(
        _svm_kernel,
        out_shape=jax.ShapeDtypeStruct((b_pad, c_pad), jnp.float32),
        grid=grid,
        in_specs=[
            pl.BlockSpec((tile_b, D + 1), lambda i: (i, 0)),  # batch-tiled activations
            pl.BlockSpec((D + 1, c_pad), lambda i: (0, 0)),   # weights+bias: VMEM-resident
        ],
        out_specs=pl.BlockSpec((tile_b, c_pad), lambda i: (i, 0)),
        compiler_params=pltpu.CompilerParams(
            dimension_semantics=("parallel",),                # megacore on v7x
        ),
    )(x_aug, w_packed)
    return out


def svm_forward(x, w_packed, c_total, tile_b=None):
    """Module-semantics forward (== torch SVM.forward): logits [B, c_total]."""
    B = x.shape[0]
    return svm_forward_padded(x, w_packed, tile_b)[:B, :c_total]


def predict_pattern(padded_logits, batch, pixel_nb=25, num_classes=2):
    """Per-pixel argmax over the padded logits -> [batch, pixel_nb] int32.

    Argmax runs on the padded [b_pad, C_pad] block; only the small int32
    prediction tensor is sliced, so no full-size logits copy is materialized.
    """
    b_pad, c_pad = padded_logits.shape
    p_pad = c_pad // num_classes
    preds = jnp.argmax(padded_logits.reshape(b_pad, p_pad, num_classes), axis=-1)
    return preds[:batch, :pixel_nb].astype(jnp.int32)


if __name__ == "__main__":
    input_size = 3      # per-pixel feature vector (e.g. RGB)
    num_classes = 2
    pixel_nb = 25       # 5x5 image -> 25 pixel models
    batch = 32

    key = jax.random.PRNGKey(0)
    kx, kw, kb = jax.random.split(key, 3)

    # Deterministic init mirroring nn.Linear: U(-1/sqrt(in), 1/sqrt(in)).
    bound = 1.0 / jnp.sqrt(jnp.float32(input_size))
    weights = jax.random.uniform(
        kw, (pixel_nb, num_classes, input_size), jnp.float32, -bound, bound)
    biases = jax.random.uniform(
        kb, (pixel_nb, num_classes), jnp.float32, -bound, bound)
    x = jax.random.normal(kx, (batch, input_size), jnp.float32)

    # Pack parameters once (lane-dense, pre-transposed, bias folded as row D).
    w_packed, c_total = pack_svm_params(weights, biases)

    # Default tiling: B=32 -> tile_b=32, grid=(1,) -> a single pipelined step.
    padded = svm_forward_padded(x, w_packed)
    padded = jax.block_until_ready(padded)

    # Module-semantics logits (slice deferred to here only for the check).
    out = padded[:batch, :c_total]
    assert out.shape == (batch, pixel_nb * num_classes)

    # Reference (plain JAX) == torch SVM.forward: per-pixel Linear, concat on axis=1.
    ref = jnp.concatenate(
        [x @ weights[i].T + biases[i] for i in range(pixel_nb)], axis=1)
    assert jnp.allclose(out, ref, atol=1e-5, rtol=1e-5)

    # Predictions computed directly on the padded block (no logits slice copy).
    preds = jax.block_until_ready(predict_pattern(padded, batch, pixel_nb, num_classes))
    assert preds.shape == (batch, pixel_nb) and preds.dtype == jnp.int32
    ref_preds = jnp.argmax(ref.reshape(batch, pixel_nb, num_classes), axis=-1)
    assert jnp.array_equal(preds, ref_preds.astype(jnp.int32))

    print("KERNEL_OK")
</pallas_src>

<mosaic_0001>
module attributes {stable_mosaic.version = 11 : i64} {
  func.func @_svm_kernel(%arg0: i32, %arg1: memref<32x4xf32, #tpu.memory_space<vmem>>, %arg2: memref<4x128xf32, #tpu.memory_space<vmem>>, %arg3: memref<32x128xf32, #tpu.memory_space<vmem>>) attributes {dimension_semantics = [#tpu.dimension_semantics<parallel>], iteration_bounds = array<i64: 1>, scalar_prefetch = 0 : i64, scratch_operands = 0 : i64, tpu.core_type = #tpu.core_type<tc>, window_params = [{transform_indices = @transform_0, window_bounds = array<i64: 32, 4>}, {pipeline_mode = #tpu.pipeline_mode<synchronous>, transform_indices = @transform_1, window_bounds = array<i64: 4, 128>}, {transform_indices = @transform_2, window_bounds = array<i64: 32, 128>}]} {
    %c0 = arith.constant 0 : index
    %c0_0 = arith.constant 0 : index
    %0 = vector.load %arg1[%c0, %c0_0] : memref<32x4xf32, #tpu.memory_space<vmem>>, vector<32x4xf32>
    %c0_1 = arith.constant 0 : index
    %c0_2 = arith.constant 0 : index
    %1 = vector.load %arg2[%c0_1, %c0_2] : memref<4x128xf32, #tpu.memory_space<vmem>>, vector<4x128xf32>
    %cst = arith.constant dense<0.000000e+00> : vector<32x128xf32>
    %2 = tpu.matmul %0, %1, %cst {dimension_numbers = #tpu.dot_dimension_numbers<[1], [0], [0], [1], [0, 0, 1, 1], [], []>} : vector<32x4xf32>, vector<4x128xf32>, vector<32x128xf32> -> vector<32x128xf32>
    %c0_3 = arith.constant 0 : index
    %c0_4 = arith.constant 0 : index
    %3 = vector.load %arg3[%c0_3, %c0_4] : memref<32x128xf32, #tpu.memory_space<vmem>>, vector<32x128xf32>
    tpu.vector_store %arg3[%c0_3, %c0_4], %2 {strides = array<i32>} : memref<32x128xf32, #tpu.memory_space<vmem>>, vector<32x128xf32>,
    return
  }
  func.func @transform_0(%arg0: i32) -> (i32, i32) {
    %c0_i32 = arith.constant 0 : i32
    %c0_i32_0 = arith.constant 0 : i32
    return %arg0, %c0_i32 : i32, i32
  }
  func.func @transform_1(%arg0: i32) -> (i32, i32) {
    %c0_i32 = arith.constant 0 : i32
    %c0_i32_0 = arith.constant 0 : i32
    %c0_i32_1 = arith.constant 0 : i32
    return %c0_i32, %c0_i32_0 : i32, i32
  }
  func.func @transform_2(%arg0: i32) -> (i32, i32) {
    %c0_i32 = arith.constant 0 : i32
    %c0_i32_0 = arith.constant 0 : i32
    return %arg0, %c0_i32 : i32, i32
  }
}

</mosaic_0001>

<bundles_post_ra>
// kernel: tpu_custom_call.1
= control target key start
LH: loop header
LB: loop body
LE: loop exit
PB: predicated region body
PF: predicated region fallthrough
CT: control target
= control target key end

     0   :  { %vm30_vm0 = vcmask 1043456   ;;  %vm17_vm1 = vcmask 31744   ;;  %s231_s0 = inlined_call_operand.vmem [shape: f32[32,4], index: 0, kind: input, shape index: {}]   ;;  %s232_s1 = inlined_call_operand.vmem [shape: f32[4,128], index: 1, kind: input, shape index: {}]   ;;  %s233_s2 = inlined_call_operand.hbm [shape: f32[32,128], index: 2, kind: output, shape index: {}]  }
   0x1   :  { %v16_v0 = vld [vmem:[%s232_s1] sm:$0xf]  ;;  %v14_v2 = vld [vmem:[%s231_s0 + $0x10] sm:$0xff]  ;;  %v13_v3 = vld [vmem:[%s231_s0 + $0x8] sm:$0xff] }
   0x2   :  { %v12_v1 = vld [vmem:[%s231_s0] sm:$0xff]  ;;  %149 = vmatprep.subr.msk.mxu0 %vm30_vm0, %v16_v0  ;;  %157 = vmatprep.subr.msk.mxu1 %vm30_vm0, %v16_v0  ;;  %v15_v4 = vld [vmem:[%s231_s0 + $0x18] sm:$0xff] }
   0x3   :  { %7 = vsyncpa [#allocation3], 0  ;;  %150 = vmatpush3.msk.msra.mxu0 %vm30_vm0, %v16_v0  ;;  %158 = vmatpush3.msk.msra.mxu1 %vm30_vm0, %v16_v0  ;;  %s186_s1 = smov [#allocation2]  }
   0x4   :  { %151 = vmatprep.mubr.msk.f32.mxu0 %vm17_vm1, %v12_v1  ;;  %154 = vmatprep.mubr.msk.f32.mxu1 %vm17_vm1, %v14_v2  ;;  %s128_s19 = sshll.u32 %s186_s1, 4  ;;  %s129_s19 = int_to_ptr.vmem [resolvable:$true] %s128_s19 }
   0x5   :  { %152 = vmatmul.mubr.msk.f32.vlgmr.msra.gmra.mrb[0].mxu0 %vm17_vm1, %v13_v3  ;;  %155 = vmatmul.mubr.msk.f32.vlgmr.msra.gmra.mrb[0].mxu1 %vm17_vm1, %v15_v4  ;;  %s162_s20 = scalar_lea.vmem %s129_s19, 512  ;;  %p167_p1 = scmp.lt.s32.totalorder %s129_s19, %s129_s19 }
   0x6   :  { %p163_p0 = scmp.ne.s32.totalorder %s129_s19, %s162_s20  ;;  %p168_p2 = scmp.lt.s32.totalorder %s162_s20, %s162_s20 }
   0x8   :  { %p169_p3 = por %p168_p2, %p167_p1 }
   0xa   :  { %p170_p4 = pnand %p169_p3, %p163_p0 }
  0xd8   :  { %v153_v5 = vpop.f32.mrb[0].mxu0  ;;  %v156_v6 = vpop.f32.mrb[0].mxu1 }
  0xd9   :  { %120 = vst [vmem:[#allocation2 + $0x8] sm:$0xff] %v153_v5  ;;  %122 = vst [vmem:[#allocation2 + $0x18] sm:$0xff] %v156_v6  ;;  %v100_v7 = vpop.f32.mrb[1].mxu0  ;;  %v110_v8 = vpop.f32.mrb[1].mxu1 }
  0xda   :  { %119 = vst [vmem:[#allocation2] sm:$0xff] %v100_v7  ;;  %121 = vst [vmem:[#allocation2 + $0x10] sm:$0xff] %v110_v8 }
  0xdb   :  { %173 = shalt.err (!%p170_p4)
}
  0xdc   :  { %s174_s22 = scalar_lea.hbm %s233_s2, 512 }
  0xdd   :  { %p175_p5 = scmp.ne.s32.totalorder %s233_s2, %s174_s22  ;;  %p178_p6 = scmp.lt.u32.totalorder %s174_s22, %s233_s2 }
  0xdf   :  { %p180_p7 = pnand %p178_p6, %p175_p5 }
  0xe1   :  { %183 = shalt.err (!%p180_p7)
}
  0xe2   :  { %s187_s27 = smov 128   ;;  %s188_s28 = smov 8  }
  0xe3   :  { %134 = dma.vmem_to_hbm [thread:$0]  %s129_s19, 512, %s233_s2, [#allocation3], %s187_s27, %s187_s27, %s188_s28  }
  0xe4   :  { %184 = dma.done.wait [#allocation3], 512  }
  0xe5   :  { %185 = vsyncadd [#allocation3], 4294966784 }
  0xe6   :  { %138 = vsyncpa [#allocation3], 1 }

</bundles_post_ra>
